<compile_context>
chip_gen: v7x
topology: tpu7x:2x2x1
jax: 0.10.0
libtpu: 0.0.40
codegen_flags: <defaults>
</compile_context>

<pallas_src>
import functools

import jax
import jax.numpy as jnp
from jax.experimental import pallas as pl
from jax.experimental.pallas import tpu as pltpu

_D = 1.702
_LANES = 128
_MAX_BLOCK_ROWS = 512        # (512, 128) f32 = 256 KiB per plane per grid step
_MAX_SELECT_TABLE = 512      # unroll budget for the in-kernel select-gather
_SMALL_BATCH_FAST_PATH = 16384


def _round_up(x, m):
    return ((x + m - 1) // m) * m


def _irt_gather_kernel(theta_ref, a_ref, b_ref, c_ref, sid_ref, eid_ref, out_ref):
    """Fused embedding-gather + IRT response.

    theta_ref : (S,) f32 SMEM  -- raw theta table
    a_ref     : (E,) f32 SMEM  -- D * softplus(a)  (pre-folded)
    b_ref     : (E,) f32 SMEM  -- raw b table
    c_ref     : (E,) f32 SMEM  -- sigmoid(c)       (pre-squashed)
    sid_ref   : (BR, 128) int32 VMEM block of student ids
    eid_ref   : (BR, 128) int32 VMEM block of exercise ids
    out_ref   : (BR, 128) f32 VMEM block
    """
    sid = sid_ref[...]
    eid = eid_ref[...]
    S = theta_ref.shape[0]
    E = a_ref.shape[0]

    # theta gather: S-way compare-and-select against SMEM scalars.
    theta = jnp.full(sid.shape, theta_ref[0], dtype=jnp.float32)
    for s in range(1, S):
        theta = jnp.where(sid == s, theta_ref[s], theta)

    # a/b/c gathers share one mask per exercise entry.
    a = jnp.full(eid.shape, a_ref[0], dtype=jnp.float32)
    b = jnp.full(eid.shape, b_ref[0], dtype=jnp.float32)
    c = jnp.full(eid.shape, c_ref[0], dtype=jnp.float32)
    for e in range(1, E):
        m = eid == e
        a = jnp.where(m, a_ref[e], a)
        b = jnp.where(m, b_ref[e], b)
        c = jnp.where(m, c_ref[e], c)

    # IRT: c + (1 - c) / (1 + exp(-D * a * (theta - b))); D*softplus already
    # folded into `a`, so a single EUP exp per element remains.
    out_ref[...] = c + (1.0 - c) / (1.0 + jnp.exp(-(a * (theta - b))))


def _irt_xla(theta_t, a_t, b_t, c_t, student_id, exercise_id):
    """Fused XLA fallback (tiny batches or tables too large to unroll)."""
    theta = theta_t[student_id]
    a = a_t[exercise_id]
    b = b_t[exercise_id]
    c = c_t[exercise_id]
    return c + (1.0 - c) / (1.0 + jnp.exp(-(a * (theta - b))))


@functools.partial(jax.jit, static_argnames=("force_kernel",))
def irt_forward(theta_emb, a_emb, b_emb, c_emb, student_id, exercise_id,
                *, force_kernel=False):
    """theta_emb: (S, 1); a/b/c_emb: (E, 1); student_id/exercise_id: (B,) ints."""
    B = student_id.shape[0]
    S = theta_emb.shape[0]
    E = a_emb.shape[0]

    # Hoist the transcendentals onto the tiny tables (index-independent, exact).
    theta_t = theta_emb[:, 0].astype(jnp.float32)
    a_t = _D * jax.nn.softplus(a_emb[:, 0].astype(jnp.float32))
    b_t = b_emb[:, 0].astype(jnp.float32)
    c_t = jax.nn.sigmoid(c_emb[:, 0].astype(jnp.float32))

    # Fast path: tiny batches are dominated by pad/launch overhead; very large
    # tables would blow up the unrolled in-kernel select chain.
    if (not force_kernel and B < _SMALL_BATCH_FAST_PATH) or (S + E > _MAX_SELECT_TABLE):
        # TODO(synk): large embedding tables would need a DMA-gather kernel;
        # fall back to the fused XLA expression instead.
        return _irt_xla(theta_t, a_t, b_t, c_t, student_id, exercise_id)

    sid = student_id.astype(jnp.int32)
    eid = exercise_id.astype(jnp.int32)

    # Lane-dense (rows, 128) index blocks; >= 2 grid steps so both v7x TCs work.
    rows_needed = pl.cdiv(B, _LANES)
    n_steps = max(2, pl.cdiv(rows_needed, _MAX_BLOCK_ROWS))
    block_rows = _round_up(pl.cdiv(rows_needed, n_steps), 8)
    R = block_rows * n_steps
    B_pad = R * _LANES

    sid2d = jnp.pad(sid, (0, B_pad - B)).reshape(R, _LANES)
    eid2d = jnp.pad(eid, (0, B_pad - B)).reshape(R, _LANES)

    out = pl.pallas_call(
        _irt_gather_kernel,
        out_shape=jax.ShapeDtypeStruct((R, _LANES), jnp.float32),
        grid=(n_steps,),
        in_specs=[
            pl.BlockSpec(memory_space=pltpu.MemorySpace.SMEM),   # theta table
            pl.BlockSpec(memory_space=pltpu.MemorySpace.SMEM),   # D*softplus(a)
            pl.BlockSpec(memory_space=pltpu.MemorySpace.SMEM),   # b table
            pl.BlockSpec(memory_space=pltpu.MemorySpace.SMEM),   # sigmoid(c)
            pl.BlockSpec((block_rows, _LANES), lambda i: (i, 0)),
            pl.BlockSpec((block_rows, _LANES), lambda i: (i, 0)),
        ],
        out_specs=pl.BlockSpec((block_rows, _LANES), lambda i: (i, 0)),
        compiler_params=pltpu.CompilerParams(dimension_semantics=("parallel",)),
    )(theta_t, a_t, b_t, c_t, sid2d, eid2d)

    return out.reshape(B_pad)[:B]


def irt_reference(theta_emb, a_emb, b_emb, c_emb, student_id, exercise_id):
    theta = jnp.take(theta_emb, student_id, axis=0)[:, 0]
    a = jax.nn.softplus(jnp.take(a_emb, exercise_id, axis=0)[:, 0])
    b = jnp.take(b_emb, exercise_id, axis=0)[:, 0]
    c = jax.nn.sigmoid(jnp.take(c_emb, exercise_id, axis=0)[:, 0])
    return c + (1.0 - c) / (1.0 + jnp.exp(-_D * a * (theta - b)))


if __name__ == "__main__":
    student_num, exercise_num = 16, 32
    batch = 8

    key = jax.random.PRNGKey(0)
    k_theta, k_a, k_b, k_c, k_sid, k_eid = jax.random.split(key, 6)

    # nn.Embedding default init: N(0, 1)
    theta_emb = jax.random.normal(k_theta, (student_num, 1), dtype=jnp.float32)
    a_emb = jax.random.normal(k_a, (exercise_num, 1), dtype=jnp.float32)
    b_emb = jax.random.normal(k_b, (exercise_num, 1), dtype=jnp.float32)
    c_emb = jax.random.normal(k_c, (exercise_num, 1), dtype=jnp.float32)

    student_id = jax.random.randint(k_sid, (batch,), 0, student_num, dtype=jnp.int32)
    exercise_id = jax.random.randint(k_eid, (batch,), 0, exercise_num, dtype=jnp.int32)

    # Small batch through the Pallas kernel (forced, to exercise it).
    out = jax.block_until_ready(
        irt_forward(theta_emb, a_emb, b_emb, c_emb, student_id, exercise_id,
                    force_kernel=True))
    ref = irt_reference(theta_emb, a_emb, b_emb, c_emb, student_id, exercise_id)
    assert out.shape == (batch,)
    assert jnp.allclose(out, ref, atol=1e-5, rtol=1e-5), (out, ref)

    # Small batch through the XLA fast path (default routing).
    out_fp = jax.block_until_ready(
        irt_forward(theta_emb, a_emb, b_emb, c_emb, student_id, exercise_id))
    assert jnp.allclose(out_fp, ref, atol=1e-5, rtol=1e-5)

    # Large batch: multi-step parallel grid + padding tail.
    big_batch = 70_000
    k_sid2, k_eid2 = jax.random.split(jax.random.PRNGKey(1))
    sid2 = jax.random.randint(k_sid2, (big_batch,), 0, student_num, dtype=jnp.int32)
    eid2 = jax.random.randint(k_eid2, (big_batch,), 0, exercise_num, dtype=jnp.int32)
    out2 = jax.block_until_ready(
        irt_forward(theta_emb, a_emb, b_emb, c_emb, sid2, eid2, force_kernel=True))
    ref2 = irt_reference(theta_emb, a_emb, b_emb, c_emb, sid2, eid2)
    assert out2.shape == (big_batch,)
    assert jnp.allclose(out2, ref2, atol=1e-5, rtol=1e-5)

    print("KERNEL_OK")
</pallas_src>

<mosaic_0001>
module attributes {stable_mosaic.version = 11 : i64} {
  func.func @_irt_gather_kernel(%arg0: i32, %arg1: memref<16xf32, #tpu.memory_space<smem>>, %arg2: memref<32xf32, #tpu.memory_space<smem>>, %arg3: memref<32xf32, #tpu.memory_space<smem>>, %arg4: memref<32xf32, #tpu.memory_space<smem>>, %arg5: memref<8x128xi32, #tpu.memory_space<vmem>>, %arg6: memref<8x128xi32, #tpu.memory_space<vmem>>, %arg7: memref<8x128xf32, #tpu.memory_space<vmem>>) attributes {dimension_semantics = [#tpu.dimension_semantics<parallel>], iteration_bounds = array<i64: 2>, scalar_prefetch = 0 : i64, scratch_operands = 0 : i64, tpu.core_type = #tpu.core_type<tc>, window_params = [{transform_indices = @transform_0, window_bounds = array<i64: 16>}, {transform_indices = @transform_1, window_bounds = array<i64: 32>}, {transform_indices = @transform_2, window_bounds = array<i64: 32>}, {transform_indices = @transform_3, window_bounds = array<i64: 32>}, {transform_indices = @transform_4, window_bounds = array<i64: 8, 128>}, {transform_indices = @transform_5, window_bounds = array<i64: 8, 128>}, {transform_indices = @transform_6, window_bounds = array<i64: 8, 128>}]} {
    %c0 = arith.constant 0 : index
    %c0_0 = arith.constant 0 : index
    %0 = vector.load %arg5[%c0, %c0_0] : memref<8x128xi32, #tpu.memory_space<vmem>>, vector<8x128xi32>
    %c0_1 = arith.constant 0 : index
    %c0_2 = arith.constant 0 : index
    %1 = vector.load %arg6[%c0_1, %c0_2] : memref<8x128xi32, #tpu.memory_space<vmem>>, vector<8x128xi32>
    %c0_3 = arith.constant 0 : index
    %2 = memref.load %arg1[%c0_3] : memref<16xf32, #tpu.memory_space<smem>>
    %3 = vector.broadcast %2 : f32 to vector<8x128xf32>
    %c1_i32 = arith.constant 1 : i32
    %4 = vector.broadcast %c1_i32 : i32 to vector<8x128xi32>
    %5 = arith.cmpi eq, %0, %4 : vector<8x128xi32>
    %c1 = arith.constant 1 : index
    %6 = memref.load %arg1[%c1] : memref<16xf32, #tpu.memory_space<smem>>
    %7 = vector.broadcast %6 : f32 to vector<8x128xf32>
    %8 = arith.select %5, %7, %3 : vector<8x128xi1>, vector<8x128xf32>
    %c2_i32 = arith.constant 2 : i32
    %9 = vector.broadcast %c2_i32 : i32 to vector<8x128xi32>
    %10 = arith.cmpi eq, %0, %9 : vector<8x128xi32>
    %c2 = arith.constant 2 : index
    %11 = memref.load %arg1[%c2] : memref<16xf32, #tpu.memory_space<smem>>
    %12 = vector.broadcast %11 : f32 to vector<8x128xf32>
    %13 = arith.select %10, %12, %8 : vector<8x128xi1>, vector<8x128xf32>
    %c3_i32 = arith.constant 3 : i32
    %14 = vector.broadcast %c3_i32 : i32 to vector<8x128xi32>
    %15 = arith.cmpi eq, %0, %14 : vector<8x128xi32>
    %c3 = arith.constant 3 : index
    %16 = memref.load %arg1[%c3] : memref<16xf32, #tpu.memory_space<smem>>
    %17 = vector.broadcast %16 : f32 to vector<8x128xf32>
    %18 = arith.select %15, %17, %13 : vector<8x128xi1>, vector<8x128xf32>
    %c4_i32 = arith.constant 4 : i32
    %19 = vector.broadcast %c4_i32 : i32 to vector<8x128xi32>
    %20 = arith.cmpi eq, %0, %19 : vector<8x128xi32>
    %c4 = arith.constant 4 : index
    %21 = memref.load %arg1[%c4] : memref<16xf32, #tpu.memory_space<smem>>
    %22 = vector.broadcast %21 : f32 to vector<8x128xf32>
    %23 = arith.select %20, %22, %18 : vector<8x128xi1>, vector<8x128xf32>
    %c5_i32 = arith.constant 5 : i32
    %24 = vector.broadcast %c5_i32 : i32 to vector<8x128xi32>
    %25 = arith.cmpi eq, %0, %24 : vector<8x128xi32>
    %c5 = arith.constant 5 : index
    %26 = memref.load %arg1[%c5] : memref<16xf32, #tpu.memory_space<smem>>
    %27 = vector.broadcast %26 : f32 to vector<8x128xf32>
    %28 = arith.select %25, %27, %23 : vector<8x128xi1>, vector<8x128xf32>
    %c6_i32 = arith.constant 6 : i32
    %29 = vector.broadcast %c6_i32 : i32 to vector<8x128xi32>
    %30 = arith.cmpi eq, %0, %29 : vector<8x128xi32>
    %c6 = arith.constant 6 : index
    %31 = memref.load %arg1[%c6] : memref<16xf32, #tpu.memory_space<smem>>
    %32 = vector.broadcast %31 : f32 to vector<8x128xf32>
    %33 = arith.select %30, %32, %28 : vector<8x128xi1>, vector<8x128xf32>
    %c7_i32 = arith.constant 7 : i32
    %34 = vector.broadcast %c7_i32 : i32 to vector<8x128xi32>
    %35 = arith.cmpi eq, %0, %34 : vector<8x128xi32>
    %c7 = arith.constant 7 : index
    %36 = memref.load %arg1[%c7] : memref<16xf32, #tpu.memory_space<smem>>
    %37 = vector.broadcast %36 : f32 to vector<8x128xf32>
    %38 = arith.select %35, %37, %33 : vector<8x128xi1>, vector<8x128xf32>
    %c8_i32 = arith.constant 8 : i32
    %39 = vector.broadcast %c8_i32 : i32 to vector<8x128xi32>
    %40 = arith.cmpi eq, %0, %39 : vector<8x128xi32>
    %c8 = arith.constant 8 : index
    %41 = memref.load %arg1[%c8] : memref<16xf32, #tpu.memory_space<smem>>
    %42 = vector.broadcast %41 : f32 to vector<8x128xf32>
    %43 = arith.select %40, %42, %38 : vector<8x128xi1>, vector<8x128xf32>
    %c9_i32 = arith.constant 9 : i32
    %44 = vector.broadcast %c9_i32 : i32 to vector<8x128xi32>
    %45 = arith.cmpi eq, %0, %44 : vector<8x128xi32>
    %c9 = arith.constant 9 : index
    %46 = memref.load %arg1[%c9] : memref<16xf32, #tpu.memory_space<smem>>
    %47 = vector.broadcast %46 : f32 to vector<8x128xf32>
    %48 = arith.select %45, %47, %43 : vector<8x128xi1>, vector<8x128xf32>
    %c10_i32 = arith.constant 10 : i32
    %49 = vector.broadcast %c10_i32 : i32 to vector<8x128xi32>
    %50 = arith.cmpi eq, %0, %49 : vector<8x128xi32>
    %c10 = arith.constant 10 : index
    %51 = memref.load %arg1[%c10] : memref<16xf32, #tpu.memory_space<smem>>
    %52 = vector.broadcast %51 : f32 to vector<8x128xf32>
    %53 = arith.select %50, %52, %48 : vector<8x128xi1>, vector<8x128xf32>
    %c11_i32 = arith.constant 11 : i32
    %54 = vector.broadcast %c11_i32 : i32 to vector<8x128xi32>
    %55 = arith.cmpi eq, %0, %54 : vector<8x128xi32>
    %c11 = arith.constant 11 : index
    %56 = memref.load %arg1[%c11] : memref<16xf32, #tpu.memory_space<smem>>
    %57 = vector.broadcast %56 : f32 to vector<8x128xf32>
    %58 = arith.select %55, %57, %53 : vector<8x128xi1>, vector<8x128xf32>
    %c12_i32 = arith.constant 12 : i32
    %59 = vector.broadcast %c12_i32 : i32 to vector<8x128xi32>
    %60 = arith.cmpi eq, %0, %59 : vector<8x128xi32>
    %c12 = arith.constant 12 : index
    %61 = memref.load %arg1[%c12] : memref<16xf32, #tpu.memory_space<smem>>
    %62 = vector.broadcast %61 : f32 to vector<8x128xf32>
    %63 = arith.select %60, %62, %58 : vector<8x128xi1>, vector<8x128xf32>
    %c13_i32 = arith.constant 13 : i32
    %64 = vector.broadcast %c13_i32 : i32 to vector<8x128xi32>
    %65 = arith.cmpi eq, %0, %64 : vector<8x128xi32>
    %c13 = arith.constant 13 : index
    %66 = memref.load %arg1[%c13] : memref<16xf32, #tpu.memory_space<smem>>
    %67 = vector.broadcast %66 : f32 to vector<8x128xf32>
    %68 = arith.select %65, %67, %63 : vector<8x128xi1>, vector<8x128xf32>
    %c14_i32 = arith.constant 14 : i32
    %69 = vector.broadcast %c14_i32 : i32 to vector<8x128xi32>
    %70 = arith.cmpi eq, %0, %69 : vector<8x128xi32>
    %c14 = arith.constant 14 : index
    %71 = memref.load %arg1[%c14] : memref<16xf32, #tpu.memory_space<smem>>
    %72 = vector.broadcast %71 : f32 to vector<8x128xf32>
    %73 = arith.select %70, %72, %68 : vector<8x128xi1>, vector<8x128xf32>
    %c15_i32 = arith.constant 15 : i32
    %74 = vector.broadcast %c15_i32 : i32 to vector<8x128xi32>
    %75 = arith.cmpi eq, %0, %74 : vector<8x128xi32>
    %c15 = arith.constant 15 : index
    %76 = memref.load %arg1[%c15] : memref<16xf32, #tpu.memory_space<smem>>
    %77 = vector.broadcast %76 : f32 to vector<8x128xf32>
    %78 = arith.select %75, %77, %73 : vector<8x128xi1>, vector<8x128xf32>
    %c0_4 = arith.constant 0 : index
    %79 = memref.load %arg2[%c0_4] : memref<32xf32, #tpu.memory_space<smem>>
    %80 = vector.broadcast %79 : f32 to vector<8x128xf32>
    %c0_5 = arith.constant 0 : index
    %81 = memref.load %arg3[%c0_5] : memref<32xf32, #tpu.memory_space<smem>>
    %82 = vector.broadcast %81 : f32 to vector<8x128xf32>
    %c0_6 = arith.constant 0 : index
    %83 = memref.load %arg4[%c0_6] : memref<32xf32, #tpu.memory_space<smem>>
    %84 = vector.broadcast %83 : f32 to vector<8x128xf32>
    %c1_i32_7 = arith.constant 1 : i32
    %85 = vector.broadcast %c1_i32_7 : i32 to vector<8x128xi32>
    %86 = arith.cmpi eq, %1, %85 : vector<8x128xi32>
    %c1_8 = arith.constant 1 : index
    %87 = memref.load %arg2[%c1_8] : memref<32xf32, #tpu.memory_space<smem>>
    %88 = vector.broadcast %87 : f32 to vector<8x128xf32>
    %89 = arith.select %86, %88, %80 : vector<8x128xi1>, vector<8x128xf32>
    %c1_9 = arith.constant 1 : index
    %90 = memref.load %arg3[%c1_9] : memref<32xf32, #tpu.memory_space<smem>>
    %91 = vector.broadcast %90 : f32 to vector<8x128xf32>
    %92 = arith.select %86, %91, %82 : vector<8x128xi1>, vector<8x128xf32>
    %c1_10 = arith.constant 1 : index
    %93 = memref.load %arg4[%c1_10] : memref<32xf32, #tpu.memory_space<smem>>
    %94 = vector.broadcast %93 : f32 to vector<8x128xf32>
    %95 = arith.select %86, %94, %84 : vector<8x128xi1>, vector<8x128xf32>
    %c2_i32_11 = arith.constant 2 : i32
    %96 = vector.broadcast %c2_i32_11 : i32 to vector<8x128xi32>
    %97 = arith.cmpi eq, %1, %96 : vector<8x128xi32>
    %c2_12 = arith.constant 2 : index
    %98 = memref.load %arg2[%c2_12] : memref<32xf32, #tpu.memory_space<smem>>
    %99 = vector.broadcast %98 : f32 to vector<8x128xf32>
    %100 = arith.select %97, %99, %89 : vector<8x128xi1>, vector<8x128xf32>
    %c2_13 = arith.constant 2 : index
    %101 = memref.load %arg3[%c2_13] : memref<32xf32, #tpu.memory_space<smem>>
    %102 = vector.broadcast %101 : f32 to vector<8x128xf32>
    %103 = arith.select %97, %102, %92 : vector<8x128xi1>, vector<8x128xf32>
    %c2_14 = arith.constant 2 : index
    %104 = memref.load %arg4[%c2_14] : memref<32xf32, #tpu.memory_space<smem>>
    %105 = vector.broadcast %104 : f32 to vector<8x128xf32>
    %106 = arith.select %97, %105, %95 : vector<8x128xi1>, vector<8x128xf32>
    %c3_i32_15 = arith.constant 3 : i32
    %107 = vector.broadcast %c3_i32_15 : i32 to vector<8x128xi32>
    %108 = arith.cmpi eq, %1, %107 : vector<8x128xi32>
    %c3_16 = arith.constant 3 : index
    %109 = memref.load %arg2[%c3_16] : memref<32xf32, #tpu.memory_space<smem>>
    %110 = vector.broadcast %109 : f32 to vector<8x128xf32>
    %111 = arith.select %108, %110, %100 : vector<8x128xi1>, vector<8x128xf32>
    %c3_17 = arith.constant 3 : index
    %112 = memref.load %arg3[%c3_17] : memref<32xf32, #tpu.memory_space<smem>>
    %113 = vector.broadcast %112 : f32 to vector<8x128xf32>
    %114 = arith.select %108, %113, %103 : vector<8x128xi1>, vector<8x128xf32>
    %c3_18 = arith.constant 3 : index
    %115 = memref.load %arg4[%c3_18] : memref<32xf32, #tpu.memory_space<smem>>
    %116 = vector.broadcast %115 : f32 to vector<8x128xf32>
    %117 = arith.select %108, %116, %106 : vector<8x128xi1>, vector<8x128xf32>
    %c4_i32_19 = arith.constant 4 : i32
    %118 = vector.broadcast %c4_i32_19 : i32 to vector<8x128xi32>
    %119 = arith.cmpi eq, %1, %118 : vector<8x128xi32>
    %c4_20 = arith.constant 4 : index
    %120 = memref.load %arg2[%c4_20] : memref<32xf32, #tpu.memory_space<smem>>
    %121 = vector.broadcast %120 : f32 to vector<8x128xf32>
    %122 = arith.select %119, %121, %111 : vector<8x128xi1>, vector<8x128xf32>
    %c4_21 = arith.constant 4 : index
    %123 = memref.load %arg3[%c4_21] : memref<32xf32, #tpu.memory_space<smem>>
    %124 = vector.broadcast %123 : f32 to vector<8x128xf32>
    %125 = arith.select %119, %124, %114 : vector<8x128xi1>, vector<8x128xf32>
    %c4_22 = arith.constant 4 : index
    %126 = memref.load %arg4[%c4_22] : memref<32xf32, #tpu.memory_space<smem>>
    %127 = vector.broadcast %126 : f32 to vector<8x128xf32>
    %128 = arith.select %119, %127, %117 : vector<8x128xi1>, vector<8x128xf32>
    %c5_i32_23 = arith.constant 5 : i32
    %129 = vector.broadcast %c5_i32_23 : i32 to vector<8x128xi32>
    %130 = arith.cmpi eq, %1, %129 : vector<8x128xi32>
    %c5_24 = arith.constant 5 : index
    %131 = memref.load %arg2[%c5_24] : memref<32xf32, #tpu.memory_space<smem>>
    %132 = vector.broadcast %131 : f32 to vector<8x128xf32>
    %133 = arith.select %130, %132, %122 : vector<8x128xi1>, vector<8x128xf32>
    %c5_25 = arith.constant 5 : index
    %134 = memref.load %arg3[%c5_25] : memref<32xf32, #tpu.memory_space<smem>>
    %135 = vector.broadcast %134 : f32 to vector<8x128xf32>
    %136 = arith.select %130, %135, %125 : vector<8x128xi1>, vector<8x128xf32>
    %c5_26 = arith.constant 5 : index
    %137 = memref.load %arg4[%c5_26] : memref<32xf32, #tpu.memory_space<smem>>
    %138 = vector.broadcast %137 : f32 to vector<8x128xf32>
    %139 = arith.select %130, %138, %128 : vector<8x128xi1>, vector<8x128xf32>
    %c6_i32_27 = arith.constant 6 : i32
    %140 = vector.broadcast %c6_i32_27 : i32 to vector<8x128xi32>
    %141 = arith.cmpi eq, %1, %140 : vector<8x128xi32>
    %c6_28 = arith.constant 6 : index
    %142 = memref.load %arg2[%c6_28] : memref<32xf32, #tpu.memory_space<smem>>
    %143 = vector.broadcast %142 : f32 to vector<8x128xf32>
    %144 = arith.select %141, %143, %133 : vector<8x128xi1>, vector<8x128xf32>
    %c6_29 = arith.constant 6 : index
    %145 = memref.load %arg3[%c6_29] : memref<32xf32, #tpu.memory_space<smem>>
    %146 = vector.broadcast %145 : f32 to vector<8x128xf32>
    %147 = arith.select %141, %146, %136 : vector<8x128xi1>, vector<8x128xf32>
    %c6_30 = arith.constant 6 : index
    %148 = memref.load %arg4[%c6_30] : memref<32xf32, #tpu.memory_space<smem>>
    %149 = vector.broadcast %148 : f32 to vector<8x128xf32>
    %150 = arith.select %141, %149, %139 : vector<8x128xi1>, vector<8x128xf32>
    %c7_i32_31 = arith.constant 7 : i32
    %151 = vector.broadcast %c7_i32_31 : i32 to vector<8x128xi32>
    %152 = arith.cmpi eq, %1, %151 : vector<8x128xi32>
    %c7_32 = arith.constant 7 : index
    %153 = memref.load %arg2[%c7_32] : memref<32xf32, #tpu.memory_space<smem>>
    %154 = vector.broadcast %153 : f32 to vector<8x128xf32>
    %155 = arith.select %152, %154, %144 : vector<8x128xi1>, vector<8x128xf32>
    %c7_33 = arith.constant 7 : index
    %156 = memref.load %arg3[%c7_33] : memref<32xf32, #tpu.memory_space<smem>>
    %157 = vector.broadcast %156 : f32 to vector<8x128xf32>
    %158 = arith.select %152, %157, %147 : vector<8x128xi1>, vector<8x128xf32>
    %c7_34 = arith.constant 7 : index
    %159 = memref.load %arg4[%c7_34] : memref<32xf32, #tpu.memory_space<smem>>
    %160 = vector.broadcast %159 : f32 to vector<8x128xf32>
    %161 = arith.select %152, %160, %150 : vector<8x128xi1>, vector<8x128xf32>
    %c8_i32_35 = arith.constant 8 : i32
    %162 = vector.broadcast %c8_i32_35 : i32 to vector<8x128xi32>
    %163 = arith.cmpi eq, %1, %162 : vector<8x128xi32>
    %c8_36 = arith.constant 8 : index
    %164 = memref.load %arg2[%c8_36] : memref<32xf32, #tpu.memory_space<smem>>
    %165 = vector.broadcast %164 : f32 to vector<8x128xf32>
    %166 = arith.select %163, %165, %155 : vector<8x128xi1>, vector<8x128xf32>
    %c8_37 = arith.constant 8 : index
    %167 = memref.load %arg3[%c8_37] : memref<32xf32, #tpu.memory_space<smem>>
    %168 = vector.broadcast %167 : f32 to vector<8x128xf32>
    %169 = arith.select %163, %168, %158 : vector<8x128xi1>, vector<8x128xf32>
    %c8_38 = arith.constant 8 : index
    %170 = memref.load %arg4[%c8_38] : memref<32xf32, #tpu.memory_space<smem>>
    %171 = vector.broadcast %170 : f32 to vector<8x128xf32>
    %172 = arith.select %163, %171, %161 : vector<8x128xi1>, vector<8x128xf32>
    %c9_i32_39 = arith.constant 9 : i32
    %173 = vector.broadcast %c9_i32_39 : i32 to vector<8x128xi32>
    %174 = arith.cmpi eq, %1, %173 : vector<8x128xi32>
    %c9_40 = arith.constant 9 : index
    %175 = memref.load %arg2[%c9_40] : memref<32xf32, #tpu.memory_space<smem>>
    %176 = vector.broadcast %175 : f32 to vector<8x128xf32>
    %177 = arith.select %174, %176, %166 : vector<8x128xi1>, vector<8x128xf32>
    %c9_41 = arith.constant 9 : index
    %178 = memref.load %arg3[%c9_41] : memref<32xf32, #tpu.memory_space<smem>>
    %179 = vector.broadcast %178 : f32 to vector<8x128xf32>
    %180 = arith.select %174, %179, %169 : vector<8x128xi1>, vector<8x128xf32>
    %c9_42 = arith.constant 9 : index
    %181 = memref.load %arg4[%c9_42] : memref<32xf32, #tpu.memory_space<smem>>
    %182 = vector.broadcast %181 : f32 to vector<8x128xf32>
    %183 = arith.select %174, %182, %172 : vector<8x128xi1>, vector<8x128xf32>
    %c10_i32_43 = arith.constant 10 : i32
    %184 = vector.broadcast %c10_i32_43 : i32 to vector<8x128xi32>
    %185 = arith.cmpi eq, %1, %184 : vector<8x128xi32>
    %c10_44 = arith.constant 10 : index
    %186 = memref.load %arg2[%c10_44] : memref<32xf32, #tpu.memory_space<smem>>
    %187 = vector.broadcast %186 : f32 to vector<8x128xf32>
    %188 = arith.select %185, %187, %177 : vector<8x128xi1>, vector<8x128xf32>
    %c10_45 = arith.constant 10 : index
    %189 = memref.load %arg3[%c10_45] : memref<32xf32, #tpu.memory_space<smem>>
    %190 = vector.broadcast %189 : f32 to vector<8x128xf32>
    %191 = arith.select %185, %190, %180 : vector<8x128xi1>, vector<8x128xf32>
    %c10_46 = arith.constant 10 : index
    %192 = memref.load %arg4[%c10_46] : memref<32xf32, #tpu.memory_space<smem>>
    %193 = vector.broadcast %192 : f32 to vector<8x128xf32>
    %194 = arith.select %185, %193, %183 : vector<8x128xi1>, vector<8x128xf32>
    %c11_i32_47 = arith.constant 11 : i32
    %195 = vector.broadcast %c11_i32_47 : i32 to vector<8x128xi32>
    %196 = arith.cmpi eq, %1, %195 : vector<8x128xi32>
    %c11_48 = arith.constant 11 : index
    %197 = memref.load %arg2[%c11_48] : memref<32xf32, #tpu.memory_space<smem>>
    %198 = vector.broadcast %197 : f32 to vector<8x128xf32>
    %199 = arith.select %196, %198, %188 : vector<8x128xi1>, vector<8x128xf32>
    %c11_49 = arith.constant 11 : index
    %200 = memref.load %arg3[%c11_49] : memref<32xf32, #tpu.memory_space<smem>>
    %201 = vector.broadcast %200 : f32 to vector<8x128xf32>
    %202 = arith.select %196, %201, %191 : vector<8x128xi1>, vector<8x128xf32>
    %c11_50 = arith.constant 11 : index
    %203 = memref.load %arg4[%c11_50] : memref<32xf32, #tpu.memory_space<smem>>
    %204 = vector.broadcast %203 : f32 to vector<8x128xf32>
    %205 = arith.select %196, %204, %194 : vector<8x128xi1>, vector<8x128xf32>
    %c12_i32_51 = arith.constant 12 : i32
    %206 = vector.broadcast %c12_i32_51 : i32 to vector<8x128xi32>
    %207 = arith.cmpi eq, %1, %206 : vector<8x128xi32>
    %c12_52 = arith.constant 12 : index
    %208 = memref.load %arg2[%c12_52] : memref<32xf32, #tpu.memory_space<smem>>
    %209 = vector.broadcast %208 : f32 to vector<8x128xf32>
    %210 = arith.select %207, %209, %199 : vector<8x128xi1>, vector<8x128xf32>
    %c12_53 = arith.constant 12 : index
    %211 = memref.load %arg3[%c12_53] : memref<32xf32, #tpu.memory_space<smem>>
    %212 = vector.broadcast %211 : f32 to vector<8x128xf32>
    %213 = arith.select %207, %212, %202 : vector<8x128xi1>, vector<8x128xf32>
    %c12_54 = arith.constant 12 : index
    %214 = memref.load %arg4[%c12_54] : memref<32xf32, #tpu.memory_space<smem>>
    %215 = vector.broadcast %214 : f32 to vector<8x128xf32>
    %216 = arith.select %207, %215, %205 : vector<8x128xi1>, vector<8x128xf32>
    %c13_i32_55 = arith.constant 13 : i32
    %217 = vector.broadcast %c13_i32_55 : i32 to vector<8x128xi32>
    %218 = arith.cmpi eq, %1, %217 : vector<8x128xi32>
    %c13_56 = arith.constant 13 : index
    %219 = memref.load %arg2[%c13_56] : memref<32xf32, #tpu.memory_space<smem>>
    %220 = vector.broadcast %219 : f32 to vector<8x128xf32>
    %221 = arith.select %218, %220, %210 : vector<8x128xi1>, vector<8x128xf32>
    %c13_57 = arith.constant 13 : index
    %222 = memref.load %arg3[%c13_57] : memref<32xf32, #tpu.memory_space<smem>>
    %223 = vector.broadcast %222 : f32 to vector<8x128xf32>
    %224 = arith.select %218, %223, %213 : vector<8x128xi1>, vector<8x128xf32>
    %c13_58 = arith.constant 13 : index
    %225 = memref.load %arg4[%c13_58] : memref<32xf32, #tpu.memory_space<smem>>
    %226 = vector.broadcast %225 : f32 to vector<8x128xf32>
    %227 = arith.select %218, %226, %216 : vector<8x128xi1>, vector<8x128xf32>
    %c14_i32_59 = arith.constant 14 : i32
    %228 = vector.broadcast %c14_i32_59 : i32 to vector<8x128xi32>
    %229 = arith.cmpi eq, %1, %228 : vector<8x128xi32>
    %c14_60 = arith.constant 14 : index
    %230 = memref.load %arg2[%c14_60] : memref<32xf32, #tpu.memory_space<smem>>
    %231 = vector.broadcast %230 : f32 to vector<8x128xf32>
    %232 = arith.select %229, %231, %221 : vector<8x128xi1>, vector<8x128xf32>
    %c14_61 = arith.constant 14 : index
    %233 = memref.load %arg3[%c14_61] : memref<32xf32, #tpu.memory_space<smem>>
    %234 = vector.broadcast %233 : f32 to vector<8x128xf32>
    %235 = arith.select %229, %234, %224 : vector<8x128xi1>, vector<8x128xf32>
    %c14_62 = arith.constant 14 : index
    %236 = memref.load %arg4[%c14_62] : memref<32xf32, #tpu.memory_space<smem>>
    %237 = vector.broadcast %236 : f32 to vector<8x128xf32>
    %238 = arith.select %229, %237, %227 : vector<8x128xi1>, vector<8x128xf32>
    %c15_i32_63 = arith.constant 15 : i32
    %239 = vector.broadcast %c15_i32_63 : i32 to vector<8x128xi32>
    %240 = arith.cmpi eq, %1, %239 : vector<8x128xi32>
    %c15_64 = arith.constant 15 : index
    %241 = memref.load %arg2[%c15_64] : memref<32xf32, #tpu.memory_space<smem>>
    %242 = vector.broadcast %241 : f32 to vector<8x128xf32>
    %243 = arith.select %240, %242, %232 : vector<8x128xi1>, vector<8x128xf32>
    %c15_65 = arith.constant 15 : index
    %244 = memref.load %arg3[%c15_65] : memref<32xf32, #tpu.memory_space<smem>>
    %245 = vector.broadcast %244 : f32 to vector<8x128xf32>
    %246 = arith.select %240, %245, %235 : vector<8x128xi1>, vector<8x128xf32>
    %c15_66 = arith.constant 15 : index
    %247 = memref.load %arg4[%c15_66] : memref<32xf32, #tpu.memory_space<smem>>
    %248 = vector.broadcast %247 : f32 to vector<8x128xf32>
    %249 = arith.select %240, %248, %238 : vector<8x128xi1>, vector<8x128xf32>
    %c16_i32 = arith.constant 16 : i32
    %250 = vector.broadcast %c16_i32 : i32 to vector<8x128xi32>
    %251 = arith.cmpi eq, %1, %250 : vector<8x128xi32>
    %c16 = arith.constant 16 : index
    %252 = memref.load %arg2[%c16] : memref<32xf32, #tpu.memory_space<smem>>
    %253 = vector.broadcast %252 : f32 to vector<8x128xf32>
    %254 = arith.select %251, %253, %243 : vector<8x128xi1>, vector<8x128xf32>
    %c16_67 = arith.constant 16 : index
    %255 = memref.load %arg3[%c16_67] : memref<32xf32, #tpu.memory_space<smem>>
    %256 = vector.broadcast %255 : f32 to vector<8x128xf32>
    %257 = arith.select %251, %256, %246 : vector<8x128xi1>, vector<8x128xf32>
    %c16_68 = arith.constant 16 : index
    %258 = memref.load %arg4[%c16_68] : memref<32xf32, #tpu.memory_space<smem>>
    %259 = vector.broadcast %258 : f32 to vector<8x128xf32>
    %260 = arith.select %251, %259, %249 : vector<8x128xi1>, vector<8x128xf32>
    %c17_i32 = arith.constant 17 : i32
    %261 = vector.broadcast %c17_i32 : i32 to vector<8x128xi32>
    %262 = arith.cmpi eq, %1, %261 : vector<8x128xi32>
    %c17 = arith.constant 17 : index
    %263 = memref.load %arg2[%c17] : memref<32xf32, #tpu.memory_space<smem>>
    %264 = vector.broadcast %263 : f32 to vector<8x128xf32>
    %265 = arith.select %262, %264, %254 : vector<8x128xi1>, vector<8x128xf32>
    %c17_69 = arith.constant 17 : index
    %266 = memref.load %arg3[%c17_69] : memref<32xf32, #tpu.memory_space<smem>>
    %267 = vector.broadcast %266 : f32 to vector<8x128xf32>
    %268 = arith.select %262, %267, %257 : vector<8x128xi1>, vector<8x128xf32>
    %c17_70 = arith.constant 17 : index
    %269 = memref.load %arg4[%c17_70] : memref<32xf32, #tpu.memory_space<smem>>
    %270 = vector.broadcast %269 : f32 to vector<8x128xf32>
    %271 = arith.select %262, %270, %260 : vector<8x128xi1>, vector<8x128xf32>
    %c18_i32 = arith.constant 18 : i32
    %272 = vector.broadcast %c18_i32 : i32 to vector<8x128xi32>
    %273 = arith.cmpi eq, %1, %272 : vector<8x128xi32>
    %c18 = arith.constant 18 : index
    %274 = memref.load %arg2[%c18] : memref<32xf32, #tpu.memory_space<smem>>
    %275 = vector.broadcast %274 : f32 to vector<8x128xf32>
    %276 = arith.select %273, %275, %265 : vector<8x128xi1>, vector<8x128xf32>
    %c18_71 = arith.constant 18 : index
    %277 = memref.load %arg3[%c18_71] : memref<32xf32, #tpu.memory_space<smem>>
    %278 = vector.broadcast %277 : f32 to vector<8x128xf32>
    %279 = arith.select %273, %278, %268 : vector<8x128xi1>, vector<8x128xf32>
    %c18_72 = arith.constant 18 : index
    %280 = memref.load %arg4[%c18_72] : memref<32xf32, #tpu.memory_space<smem>>
    %281 = vector.broadcast %280 : f32 to vector<8x128xf32>
    %282 = arith.select %273, %281, %271 : vector<8x128xi1>, vector<8x128xf32>
    %c19_i32 = arith.constant 19 : i32
    %283 = vector.broadcast %c19_i32 : i32 to vector<8x128xi32>
    %284 = arith.cmpi eq, %1, %283 : vector<8x128xi32>
    %c19 = arith.constant 19 : index
    %285 = memref.load %arg2[%c19] : memref<32xf32, #tpu.memory_space<smem>>
    %286 = vector.broadcast %285 : f32 to vector<8x128xf32>
    %287 = arith.select %284, %286, %276 : vector<8x128xi1>, vector<8x128xf32>
    %c19_73 = arith.constant 19 : index
    %288 = memref.load %arg3[%c19_73] : memref<32xf32, #tpu.memory_space<smem>>
    %289 = vector.broadcast %288 : f32 to vector<8x128xf32>
    %290 = arith.select %284, %289, %279 : vector<8x128xi1>, vector<8x128xf32>
    %c19_74 = arith.constant 19 : index
    %291 = memref.load %arg4[%c19_74] : memref<32xf32, #tpu.memory_space<smem>>
    %292 = vector.broadcast %291 : f32 to vector<8x128xf32>
    %293 = arith.select %284, %292, %282 : vector<8x128xi1>, vector<8x128xf32>
    %c20_i32 = arith.constant 20 : i32
    %294 = vector.broadcast %c20_i32 : i32 to vector<8x128xi32>
    %295 = arith.cmpi eq, %1, %294 : vector<8x128xi32>
    %c20 = arith.constant 20 : index
    %296 = memref.load %arg2[%c20] : memref<32xf32, #tpu.memory_space<smem>>
    %297 = vector.broadcast %296 : f32 to vector<8x128xf32>
    %298 = arith.select %295, %297, %287 : vector<8x128xi1>, vector<8x128xf32>
    %c20_75 = arith.constant 20 : index
    %299 = memref.load %arg3[%c20_75] : memref<32xf32, #tpu.memory_space<smem>>
    %300 = vector.broadcast %299 : f32 to vector<8x128xf32>
    %301 = arith.select %295, %300, %290 : vector<8x128xi1>, vector<8x128xf32>
    %c20_76 = arith.constant 20 : index
    %302 = memref.load %arg4[%c20_76] : memref<32xf32, #tpu.memory_space<smem>>
    %303 = vector.broadcast %302 : f32 to vector<8x128xf32>
    %304 = arith.select %295, %303, %293 : vector<8x128xi1>, vector<8x128xf32>
    %c21_i32 = arith.constant 21 : i32
    %305 = vector.broadcast %c21_i32 : i32 to vector<8x128xi32>
    %306 = arith.cmpi eq, %1, %305 : vector<8x128xi32>
    %c21 = arith.constant 21 : index
    %307 = memref.load %arg2[%c21] : memref<32xf32, #tpu.memory_space<smem>>
    %308 = vector.broadcast %307 : f32 to vector<8x128xf32>
    %309 = arith.select %306, %308, %298 : vector<8x128xi1>, vector<8x128xf32>
    %c21_77 = arith.constant 21 : index
    %310 = memref.load %arg3[%c21_77] : memref<32xf32, #tpu.memory_space<smem>>
    %311 = vector.broadcast %310 : f32 to vector<8x128xf32>
    %312 = arith.select %306, %311, %301 : vector<8x128xi1>, vector<8x128xf32>
    %c21_78 = arith.constant 21 : index
    %313 = memref.load %arg4[%c21_78] : memref<32xf32, #tpu.memory_space<smem>>
    %314 = vector.broadcast %313 : f32 to vector<8x128xf32>
    %315 = arith.select %306, %314, %304 : vector<8x128xi1>, vector<8x128xf32>
    %c22_i32 = arith.constant 22 : i32
    %316 = vector.broadcast %c22_i32 : i32 to vector<8x128xi32>
    %317 = arith.cmpi eq, %1, %316 : vector<8x128xi32>
    %c22 = arith.constant 22 : index
    %318 = memref.load %arg2[%c22] : memref<32xf32, #tpu.memory_space<smem>>
    %319 = vector.broadcast %318 : f32 to vector<8x128xf32>
    %320 = arith.select %317, %319, %309 : vector<8x128xi1>, vector<8x128xf32>
    %c22_79 = arith.constant 22 : index
    %321 = memref.load %arg3[%c22_79] : memref<32xf32, #tpu.memory_space<smem>>
    %322 = vector.broadcast %321 : f32 to vector<8x128xf32>
    %323 = arith.select %317, %322, %312 : vector<8x128xi1>, vector<8x128xf32>
    %c22_80 = arith.constant 22 : index
    %324 = memref.load %arg4[%c22_80] : memref<32xf32, #tpu.memory_space<smem>>
    %325 = vector.broadcast %324 : f32 to vector<8x128xf32>
    %326 = arith.select %317, %325, %315 : vector<8x128xi1>, vector<8x128xf32>
    %c23_i32 = arith.constant 23 : i32
    %327 = vector.broadcast %c23_i32 : i32 to vector<8x128xi32>
    %328 = arith.cmpi eq, %1, %327 : vector<8x128xi32>
    %c23 = arith.constant 23 : index
    %329 = memref.load %arg2[%c23] : memref<32xf32, #tpu.memory_space<smem>>
    %330 = vector.broadcast %329 : f32 to vector<8x128xf32>
    %331 = arith.select %328, %330, %320 : vector<8x128xi1>, vector<8x128xf32>
    %c23_81 = arith.constant 23 : index
    %332 = memref.load %arg3[%c23_81] : memref<32xf32, #tpu.memory_space<smem>>
    %333 = vector.broadcast %332 : f32 to vector<8x128xf32>
    %334 = arith.select %328, %333, %323 : vector<8x128xi1>, vector<8x128xf32>
    %c23_82 = arith.constant 23 : index
    %335 = memref.load %arg4[%c23_82] : memref<32xf32, #tpu.memory_space<smem>>
    %336 = vector.broadcast %335 : f32 to vector<8x128xf32>
    %337 = arith.select %328, %336, %326 : vector<8x128xi1>, vector<8x128xf32>
    %c24_i32 = arith.constant 24 : i32
    %338 = vector.broadcast %c24_i32 : i32 to vector<8x128xi32>
    %339 = arith.cmpi eq, %1, %338 : vector<8x128xi32>
    %c24 = arith.constant 24 : index
    %340 = memref.load %arg2[%c24] : memref<32xf32, #tpu.memory_space<smem>>
    %341 = vector.broadcast %340 : f32 to vector<8x128xf32>
    %342 = arith.select %339, %341, %331 : vector<8x128xi1>, vector<8x128xf32>
    %c24_83 = arith.constant 24 : index
    %343 = memref.load %arg3[%c24_83] : memref<32xf32, #tpu.memory_space<smem>>
    %344 = vector.broadcast %343 : f32 to vector<8x128xf32>
    %345 = arith.select %339, %344, %334 : vector<8x128xi1>, vector<8x128xf32>
    %c24_84 = arith.constant 24 : index
    %346 = memref.load %arg4[%c24_84] : memref<32xf32, #tpu.memory_space<smem>>
    %347 = vector.broadcast %346 : f32 to vector<8x128xf32>
    %348 = arith.select %339, %347, %337 : vector<8x128xi1>, vector<8x128xf32>
    %c25_i32 = arith.constant 25 : i32
    %349 = vector.broadcast %c25_i32 : i32 to vector<8x128xi32>
    %350 = arith.cmpi eq, %1, %349 : vector<8x128xi32>
    %c25 = arith.constant 25 : index
    %351 = memref.load %arg2[%c25] : memref<32xf32, #tpu.memory_space<smem>>
    %352 = vector.broadcast %351 : f32 to vector<8x128xf32>
    %353 = arith.select %350, %352, %342 : vector<8x128xi1>, vector<8x128xf32>
    %c25_85 = arith.constant 25 : index
    %354 = memref.load %arg3[%c25_85] : memref<32xf32, #tpu.memory_space<smem>>
    %355 = vector.broadcast %354 : f32 to vector<8x128xf32>
    %356 = arith.select %350, %355, %345 : vector<8x128xi1>, vector<8x128xf32>
    %c25_86 = arith.constant 25 : index
    %357 = memref.load %arg4[%c25_86] : memref<32xf32, #tpu.memory_space<smem>>
    %358 = vector.broadcast %357 : f32 to vector<8x128xf32>
    %359 = arith.select %350, %358, %348 : vector<8x128xi1>, vector<8x128xf32>
    %c26_i32 = arith.constant 26 : i32
    %360 = vector.broadcast %c26_i32 : i32 to vector<8x128xi32>
    %361 = arith.cmpi eq, %1, %360 : vector<8x128xi32>
    %c26 = arith.constant 26 : index
    %362 = memref.load %arg2[%c26] : memref<32xf32, #tpu.memory_space<smem>>
    %363 = vector.broadcast %362 : f32 to vector<8x128xf32>
    %364 = arith.select %361, %363, %353 : vector<8x128xi1>, vector<8x128xf32>
    %c26_87 = arith.constant 26 : index
    %365 = memref.load %arg3[%c26_87] : memref<32xf32, #tpu.memory_space<smem>>
    %366 = vector.broadcast %365 : f32 to vector<8x128xf32>
    %367 = arith.select %361, %366, %356 : vector<8x128xi1>, vector<8x128xf32>
    %c26_88 = arith.constant 26 : index
    %368 = memref.load %arg4[%c26_88] : memref<32xf32, #tpu.memory_space<smem>>
    %369 = vector.broadcast %368 : f32 to vector<8x128xf32>
    %370 = arith.select %361, %369, %359 : vector<8x128xi1>, vector<8x128xf32>
    %c27_i32 = arith.constant 27 : i32
    %371 = vector.broadcast %c27_i32 : i32 to vector<8x128xi32>
    %372 = arith.cmpi eq, %1, %371 : vector<8x128xi32>
    %c27 = arith.constant 27 : index
    %373 = memref.load %arg2[%c27] : memref<32xf32, #tpu.memory_space<smem>>
    %374 = vector.broadcast %373 : f32 to vector<8x128xf32>
    %375 = arith.select %372, %374, %364 : vector<8x128xi1>, vector<8x128xf32>
    %c27_89 = arith.constant 27 : index
    %376 = memref.load %arg3[%c27_89] : memref<32xf32, #tpu.memory_space<smem>>
    %377 = vector.broadcast %376 : f32 to vector<8x128xf32>
    %378 = arith.select %372, %377, %367 : vector<8x128xi1>, vector<8x128xf32>
    %c27_90 = arith.constant 27 : index
    %379 = memref.load %arg4[%c27_90] : memref<32xf32, #tpu.memory_space<smem>>
    %380 = vector.broadcast %379 : f32 to vector<8x128xf32>
    %381 = arith.select %372, %380, %370 : vector<8x128xi1>, vector<8x128xf32>
    %c28_i32 = arith.constant 28 : i32
    %382 = vector.broadcast %c28_i32 : i32 to vector<8x128xi32>
    %383 = arith.cmpi eq, %1, %382 : vector<8x128xi32>
    %c28 = arith.constant 28 : index
    %384 = memref.load %arg2[%c28] : memref<32xf32, #tpu.memory_space<smem>>
    %385 = vector.broadcast %384 : f32 to vector<8x128xf32>
    %386 = arith.select %383, %385, %375 : vector<8x128xi1>, vector<8x128xf32>
    %c28_91 = arith.constant 28 : index
    %387 = memref.load %arg3[%c28_91] : memref<32xf32, #tpu.memory_space<smem>>
    %388 = vector.broadcast %387 : f32 to vector<8x128xf32>
    %389 = arith.select %383, %388, %378 : vector<8x128xi1>, vector<8x128xf32>
    %c28_92 = arith.constant 28 : index
    %390 = memref.load %arg4[%c28_92] : memref<32xf32, #tpu.memory_space<smem>>
    %391 = vector.broadcast %390 : f32 to vector<8x128xf32>
    %392 = arith.select %383, %391, %381 : vector<8x128xi1>, vector<8x128xf32>
    %c29_i32 = arith.constant 29 : i32
    %393 = vector.broadcast %c29_i32 : i32 to vector<8x128xi32>
    %394 = arith.cmpi eq, %1, %393 : vector<8x128xi32>
    %c29 = arith.constant 29 : index
    %395 = memref.load %arg2[%c29] : memref<32xf32, #tpu.memory_space<smem>>
    %396 = vector.broadcast %395 : f32 to vector<8x128xf32>
    %397 = arith.select %394, %396, %386 : vector<8x128xi1>, vector<8x128xf32>
    %c29_93 = arith.constant 29 : index
    %398 = memref.load %arg3[%c29_93] : memref<32xf32, #tpu.memory_space<smem>>
    %399 = vector.broadcast %398 : f32 to vector<8x128xf32>
    %400 = arith.select %394, %399, %389 : vector<8x128xi1>, vector<8x128xf32>
    %c29_94 = arith.constant 29 : index
    %401 = memref.load %arg4[%c29_94] : memref<32xf32, #tpu.memory_space<smem>>
    %402 = vector.broadcast %401 : f32 to vector<8x128xf32>
    %403 = arith.select %394, %402, %392 : vector<8x128xi1>, vector<8x128xf32>
    %c30_i32 = arith.constant 30 : i32
    %404 = vector.broadcast %c30_i32 : i32 to vector<8x128xi32>
    %405 = arith.cmpi eq, %1, %404 : vector<8x128xi32>
    %c30 = arith.constant 30 : index
    %406 = memref.load %arg2[%c30] : memref<32xf32, #tpu.memory_space<smem>>
    %407 = vector.broadcast %406 : f32 to vector<8x128xf32>
    %408 = arith.select %405, %407, %397 : vector<8x128xi1>, vector<8x128xf32>
    %c30_95 = arith.constant 30 : index
    %409 = memref.load %arg3[%c30_95] : memref<32xf32, #tpu.memory_space<smem>>
    %410 = vector.broadcast %409 : f32 to vector<8x128xf32>
    %411 = arith.select %405, %410, %400 : vector<8x128xi1>, vector<8x128xf32>
    %c30_96 = arith.constant 30 : index
    %412 = memref.load %arg4[%c30_96] : memref<32xf32, #tpu.memory_space<smem>>
    %413 = vector.broadcast %412 : f32 to vector<8x128xf32>
    %414 = arith.select %405, %413, %403 : vector<8x128xi1>, vector<8x128xf32>
    %c31_i32 = arith.constant 31 : i32
    %415 = vector.broadcast %c31_i32 : i32 to vector<8x128xi32>
    %416 = arith.cmpi eq, %1, %415 : vector<8x128xi32>
    %c31 = arith.constant 31 : index
    %417 = memref.load %arg2[%c31] : memref<32xf32, #tpu.memory_space<smem>>
    %418 = vector.broadcast %417 : f32 to vector<8x128xf32>
    %419 = arith.select %416, %418, %408 : vector<8x128xi1>, vector<8x128xf32>
    %c31_97 = arith.constant 31 : index
    %420 = memref.load %arg3[%c31_97] : memref<32xf32, #tpu.memory_space<smem>>
    %421 = vector.broadcast %420 : f32 to vector<8x128xf32>
    %422 = arith.select %416, %421, %411 : vector<8x128xi1>, vector<8x128xf32>
    %c31_98 = arith.constant 31 : index
    %423 = memref.load %arg4[%c31_98] : memref<32xf32, #tpu.memory_space<smem>>
    %424 = vector.broadcast %423 : f32 to vector<8x128xf32>
    %425 = arith.select %416, %424, %414 : vector<8x128xi1>, vector<8x128xf32>
    %cst = arith.constant 1.000000e+00 : f32
    %426 = vector.broadcast %cst : f32 to vector<8x128xf32>
    %427 = arith.subf %426, %425 : vector<8x128xf32>
    %428 = arith.subf %78, %422 : vector<8x128xf32>
    %429 = arith.mulf %419, %428 : vector<8x128xf32>
    %cst_99 = arith.constant 0.000000e+00 : f32
    %430 = vector.broadcast %cst_99 : f32 to vector<8x128xf32>
    %431 = arith.subf %430, %429 : vector<8x128xf32>
    %432 = math.exp %431 : vector<8x128xf32>
    %cst_100 = arith.constant 1.000000e+00 : f32
    %433 = vector.broadcast %cst_100 : f32 to vector<8x128xf32>
    %434 = arith.addf %433, %432 : vector<8x128xf32>
    %435 = arith.divf %427, %434 : vector<8x128xf32>
    %436 = arith.addf %425, %435 : vector<8x128xf32>
    %c0_101 = arith.constant 0 : index
    %c0_102 = arith.constant 0 : index
    %437 = vector.load %arg7[%c0_101, %c0_102] : memref<8x128xf32, #tpu.memory_space<vmem>>, vector<8x128xf32>
    tpu.vector_store %arg7[%c0_101, %c0_102], %436 {strides = array<i32>} : memref<8x128xf32, #tpu.memory_space<vmem>>, vector<8x128xf32>,
    return
  }
  func.func @transform_0(%arg0: i32) -> i32 {
    %c0_i32 = arith.constant 0 : i32
    %c0_i32_0 = arith.constant 0 : i32
    return %c0_i32 : i32
  }
  func.func @transform_1(%arg0: i32) -> i32 {
    %c0_i32 = arith.constant 0 : i32
    %c0_i32_0 = arith.constant 0 : i32
    return %c0_i32 : i32
  }
  func.func @transform_2(%arg0: i32) -> i32 {
    %c0_i32 = arith.constant 0 : i32
    %c0_i32_0 = arith.constant 0 : i32
    return %c0_i32 : i32
  }
  func.func @transform_3(%arg0: i32) -> i32 {
    %c0_i32 = arith.constant 0 : i32
    %c0_i32_0 = arith.constant 0 : i32
    return %c0_i32 : i32
  }
  func.func @transform_4(%arg0: i32) -> (i32, i32) {
    %c0_i32 = arith.constant 0 : i32
    %c0_i32_0 = arith.constant 0 : i32
    return %arg0, %c0_i32 : i32, i32
  }
  func.func @transform_5(%arg0: i32) -> (i32, i32) {
    %c0_i32 = arith.constant 0 : i32
    %c0_i32_0 = arith.constant 0 : i32
    return %arg0, %c0_i32 : i32, i32
  }
  func.func @transform_6(%arg0: i32) -> (i32, i32) {
    %c0_i32 = arith.constant 0 : i32
    %c0_i32_0 = arith.constant 0 : i32
    return %arg0, %c0_i32 : i32, i32
  }
}

</mosaic_0001>

<bundles_post_ra>
// kernel: irt_forward.1
= control target key start
LH: loop header
LB: loop body
LE: loop exit
PB: predicated region body
PF: predicated region fallthrough
CT: control target
= control target key end

     0   :  { %11 = vsyncpa [#allocation3], 0  ;;  %s1749_s0 = inlined_call_operand.vmem [shape: f32[16], index: 0, kind: input, shape index: {}]   ;;  %s1750_s1 = inlined_call_operand.vmem [shape: f32[32], index: 1, kind: input, shape index: {}]   ;;  %s1751_s2 = inlined_call_operand.vmem [shape: f32[32], index: 2, kind: input, shape index: {}]   ;;  %s1752_s3 = inlined_call_operand.vmem [shape: f32[32], index: 3, kind: input, shape index: {}]   ;;  %s1753_s4 = inlined_call_operand.vmem [shape: s32[16,128], index: 4, kind: input, shape index: {}]   ;;  %s1754_s5 = inlined_call_operand.vmem [shape: s32[16,128], index: 5, kind: input, shape index: {}]   ;;  %s1755_s6 = inlined_call_operand.vmem [shape: f32[16,128], index: 6, kind: output, shape index: {}]  }
   0x1   :  { %12 = vsyncpa [#allocation5], 0 }
   0x2   :  { %13 = vsyncpa [#allocation8], 0  ;;  %s1111_s21 = smov 0  }
   0x3 LB: > { %s210_s24 = sshll.u32 %s1750_s1, 4  ;;  %s1120_s25 = sadd.s32 4294967295, %s1070_s21   ;;  %s1070_s21 = sphi %s1111_s21, %s19_s21   ;;  %s211_s24 = int_to_ptr.vmem [resolvable:$true] %s210_s24 }
   0x4   : > { %p815_p0 = scmp.ge.s32.totalorder %s1070_s21, 1  ;;  %p186_p1 = scmp.lt.s32.totalorder %s1070_s21, 3 }
   0x5   : > { %p968_p2 = scmp.eq.s32.totalorder %s1120_s25, 0  ;;  %s199_s29 = sshll.u32 %s1749_s0, 4  ;;  %s1132_s29 = int_to_ptr.vmem [resolvable:$true] %s199_s29 }
   0x6   : > { %p1125_p3 = pnand %p815_p0, %p186_p1  ;;  %s221_s8 = sshll.u32 %s1751_s2, 4  ;;  %s1139_s8 = int_to_ptr.vmem [resolvable:$true] %s221_s8 }
   0x7   : > { %s232_s12 = sshll.u32 %s1752_s3, 4  ;;  %s992_s13 = scalar_lea.vmem %s211_s24, 16  ;;  %s1150_s12 = int_to_ptr.vmem [resolvable:$true] %s232_s12 }
   0x8   : > { %p955_p4 = pneg %p1125_p3  ;;  %p993_p6 = scmp.ne.s32.totalorder %s211_s24, %s992_s13 }
   0x9   : > { %p1000_p10 = scmp.lt.s32.totalorder %s211_s24, %s211_s24  ;;  %p1001_p11 = scmp.lt.s32.totalorder %s992_s13, %s992_s13 }
   0xa   : > { %p1143_p5 = pnand %p968_p2, %p955_p4 }
   0xb   : > { %p1002_p12 = por %p1001_p11, %p1000_p10 }
   0xc   : > { %p994_p7 = pneg %p1143_p5 }
   0xe   : > { %p995_p8 = pnand %p994_p7, %p993_p6 }
  0x10   : > { %p996_p9 = pneg %p995_p8 }
  0x12   : > { %p1003_p13 = pnand %p1002_p12, %p996_p9 }
  0x14   : > { %1006 = shalt.err (!%p1003_p13)
}
  0x15   : > { %s1072_s14 = smov [#allocation4]   ;;  %s1007_s15 = scalar_lea.vmem %s1132_s29, 16 }
  0x16   : > { %961 = dma.vmem_to_smem (!%p1143_p5), %s211_s24, 16, %s1072_s14, [#allocation5]  }
  0x17   : > { %p1008_p0 = scmp.ne.s32.totalorder %s1132_s29, %s1007_s15  ;;  %p1015_p6 = scmp.lt.s32.totalorder %s1132_s29, %s1132_s29 }
  0x18   : > { %p1016_p8 = scmp.lt.s32.totalorder %s1007_s15, %s1007_s15 }
  0x19   : > { %p1010_p1 = pnand %p1008_p0, %p994_p7 }
  0x1a   : > { %p1017_p10 = por %p1016_p8, %p1015_p6 }
  0x1b   : > { %p1011_p4 = pneg %p1010_p1 }
  0x1d   : > { %p1018_p9 = pnand %p1017_p10, %p1011_p4 }
  0x1f   : > { %1021 = shalt.err (!%p1018_p9)
}
  0x20   : > { %s1073_s16 = smov [#allocation2]   ;;  %s1022_s17 = scalar_lea.vmem %s1139_s8, 16 }
  0x21   : > { %958 = dma.vmem_to_smem (!%p1143_p5), %s1132_s29, 16, %s1073_s16, [#allocation3]  }
  0x22   : > { %p1023_p11 = scmp.ne.s32.totalorder %s1139_s8, %s1022_s17  ;;  %p1030_p0 = scmp.lt.s32.totalorder %s1139_s8, %s1139_s8 }
  0x23   : > { %p1031_p1 = scmp.lt.s32.totalorder %s1022_s17, %s1022_s17 }
  0x24   : > { %p1025_p12 = pnand %p1023_p11, %p994_p7 }
  0x25   : > { %p1032_p4 = por %p1031_p1, %p1030_p0 }
  0x26   : > { %p1026_p13 = pneg %p1025_p12 }
  0x28   : > { %p1033_p6 = pnand %p1032_p4, %p1026_p13 }
  0x2a   : > { %1036 = shalt.err (!%p1033_p6)
}
  0x2b   : > { %s1074_s18 = smov [#allocation6]   ;;  %s1037_s19 = scalar_lea.vmem %s1150_s12, 16 }
  0x2c   : > { %964 = dma.vmem_to_smem (!%p1143_p5), %s1139_s8, 16, %s1074_s18, [#allocation5]  }
  0x2d   : > { %p1038_p8 = scmp.ne.s32.totalorder %s1150_s12, %s1037_s19  ;;  %p1045_p11 = scmp.lt.s32.totalorder %s1150_s12, %s1150_s12 }
  0x2e   : > { %p1046_p12 = scmp.lt.s32.totalorder %s1037_s19, %s1037_s19 }
  0x2f   : > { %p1040_p10 = pnand %p1038_p8, %p994_p7 }
  0x30   : > { %p1047_p13 = por %p1046_p12, %p1045_p11 }
  0x31   : > { %p1041_p9 = pneg %p1040_p10 }
  0x33   : > { %p1048_p0 = pnand %p1047_p13, %p1041_p9 }
  0x35   : > { %1051 = shalt.err (!%p1048_p0)
}
  0x36   : > { %s1075_s20 = smov [#allocation7]   ;;  %259 = sbr.rel (%p1125_p3) target bundleno = 174 (0xae), region = 44 }
  0x37   : > { %967 = dma.vmem_to_smem (!%p1143_p5), %s1150_s12, 16, %s1075_s20, [#allocation8]  }
  0x3d   : > { %1057 = dma.done.wait (%p968_p2), [#allocation3], 16  }
  0x3e   : > { %1059 = vsyncadd (%p968_p2), [#allocation3], 4294967280 }
  0x3f   : > { %1061 = dma.done.wait (%p968_p2), [#allocation5], 32  }
  0x40   : > { %1063 = vsyncadd (%p968_p2), [#allocation5], 4294967264 }
  0x41   : > { %1065 = dma.done.wait (%p968_p2), [#allocation8], 16  }
  0x42   : > { %1067 = vsyncadd (%p968_p2), [#allocation8], 4294967280 }
  0x43   : > { %277 = sfence }
  0x44   : > { %p304_p3 = scmp.lt.s32.totalorder %s1120_s25, 1  ;;  %s318_s22 = sld [smem:[#allocation2]] }
  0x45   : > { %s829_s23 = sld [smem:[#allocation2 + $0x1]]  ;;  %s830_s24 = sld [smem:[#allocation2 + $0x2]] }
  0x46   : > { %s1759_s25 = smov (!%p304_p3, %s1120_s25), 1  ;;  %s831_s26 = sld [smem:[#allocation2 + $0x3]] }
  0x47   : > { %s832_s27 = sld [smem:[#allocation2 + $0x4]]  ;;  %s1205_s28 = sshll.u32 %s1759_s25, 3 }
  0x48   : > { %s833_s29 = sld [smem:[#allocation2 + $0x5]]  ;;  %s307_s8 = scalar_lea.vmem %s1753_s4, %s1205_s28 }
  0x49   : > { %v1211_v0 = vld [vmem:[%s307_s8] sm:$0xff]  ;;  %s834_s9 = sld [smem:[#allocation2 + $0x6]]  ;;  %s1215_s10 = sld [smem:[#allocation2 + $0x7]] }
  0x4a   : > { %v319_v1 = vstv %s318_s22  ;;  %vm320_vm0 = vcmp.eq.s32.totalorder %v1211_v0, 1  ;;  %vm324_vm1 = vcmp.eq.s32.totalorder %v1211_v0, 2  ;;  %vm328_vm2 = vcmp.eq.s32.totalorder %v1211_v0, 3  ;;  %s1220_s25 = sld [smem:[#allocation2 + $0x8]]  ;;  %s311_s13 = scalar_lea.vmem %s1754_s5, %s1205_s28 }
  0x4b   : > { %v322_v2 = vstv %s829_s23  ;;  %v326_v3 = vstv %s830_s24  ;;  %vm332_vm3 = vcmp.eq.s32.totalorder %v1211_v0, 4  ;;  %vm336_vm4 = vcmp.eq.s32.totalorder %v1211_v0, 5  ;;  %s1227_s14 = sld [smem:[#allocation4]]  ;;  %s1233_s17 = sld [smem:[#allocation4 + $0x1]]  ;;  %v1237_v13 = vld [vmem:[%s311_s13] sm:$0xff] }
  0x4c   : > { %v323_v4 = vsel %vm320_vm0, %v322_v2, %v319_v1  ;;  %v330_v6 = vstv %s831_s26  ;;  %vm340_vm5 = vcmp.eq.s32.totalorder %v1211_v0, 6  ;;  %s1229_s15 = sld [smem:[#allocation6]]  ;;  %s1235_s18 = sld [smem:[#allocation6 + $0x1]]  ;;  %vm344_vm6 = vcmp.eq.s32.totalorder %v1211_v0, 7 }
  0x4d   : > { %v327_v5 = vsel %vm324_vm1, %v326_v3, %v323_v4  ;;  %v334_v7 = vstv %s832_s27  ;;  %s1231_s16 = sld [smem:[#allocation7]]  ;;  %s1241_s19 = sld [smem:[#allocation7 + $0x1]]  ;;  %vm386_vm7 = vcmp.eq.s32.totalorder %v1237_v13, 1  ;;  %vm396_vm8 = vcmp.eq.s32.totalorder %v1237_v13, 2 }
  0x4e   : > { %v331_v8 = vsel %vm328_vm2, %v330_v6, %v327_v5  ;;  %v338_v9 = vstv %s833_s29  ;;  %s1243_s20 = sld [smem:[#allocation4 + $0x2]]  ;;  %s1250_s24 = sld [smem:[#allocation4 + $0x3]]  ;;  %vm406_vm9 = vcmp.eq.s32.totalorder %v1237_v13, 3  ;;  %vm416_vm10 = vcmp.eq.s32.totalorder %v1237_v13, 4 }
  0x4f   : > { %v335_v10 = vsel %vm332_vm3, %v334_v7, %v331_v8  ;;  %v342_v12 = vstv %s834_s9  ;;  %v346_v15 = vstv %s1215_s10  ;;  %s1245_s22 = sld [smem:[#allocation6 + $0x2]]  ;;  %s1252_s26 = sld [smem:[#allocation6 + $0x3]]  ;;  %vm426_vm11 = vcmp.eq.s32.totalorder %v1237_v13, 5 }
  0x50   : > { %v339_v11 = vsel %vm336_vm4, %v338_v9, %v335_v10  ;;  %s1247_s23 = sld [smem:[#allocation7 + $0x2]]  ;;  %v350_v16 = vstv %s1220_s25  ;;  %s1259_s27 = sld [smem:[#allocation7 + $0x3]]  ;;  %vm436_vm12 = vcmp.eq.s32.totalorder %v1237_v13, 6  ;;  %vm446_vm13 = vcmp.eq.s32.totalorder %v1237_v13, 7 }
  0x51   : > { %v343_v14 = vsel %vm340_vm5, %v342_v12, %v339_v11  ;;  %v381_v18 = vstv %s1227_s14  ;;  %s1261_s29 = sld [smem:[#allocation4 + $0x4]]  ;;  %v388_v21 = vstv %s1233_s17  ;;  %s1274_s8 = sld [smem:[#allocation4 + $0x5]]  ;;  %vm456_vm14 = vcmp.eq.s32.totalorder %v1237_v13, 8 }
  0x52   : > { %v1254_v17 = vsel %vm344_vm6, %v346_v15, %v343_v14  ;;  %v383_v19 = vstv %s1229_s15  ;;  %s1267_s30 = sld [smem:[#allocation6 + $0x4]]  ;;  %v391_v22 = vstv %s1235_s18  ;;  %s1276_s9 = sld [smem:[#allocation6 + $0x5]]  ;;  %v389_v23 = vsel %vm386_vm7, %v388_v21, %v381_v18 }
  0x53   : > { %v385_v20 = vstv %s1231_s16  ;;  %s1269_s7 = sld [smem:[#allocation7 + $0x4]]  ;;  %v392_v24 = vsel %vm386_vm7, %v391_v22, %v383_v19  ;;  %v394_v25 = vstv %s1241_s19  ;;  %s1284_s10 = sld [smem:[#allocation7 + $0x5]]  ;;  %vm466_vm15 = vcmp.eq.s32.totalorder %v1237_v13, 9 }
  0x54   : > { %s1286_s11 = sld [smem:[#allocation4 + $0x6]]  ;;  %v395_v26 = vsel %vm386_vm7, %v394_v25, %v385_v20  ;;  %v398_v27 = vstv %s1243_s20  ;;  %v408_v32 = vstv %s1250_s24  ;;  %s1304_s14 = sld [smem:[#allocation4 + $0x7]]  ;;  %vm476_vm0 = vcmp.eq.s32.totalorder %v1237_v13, 10 }
  0x55   : > { %v401_v28 = vstv %s1245_s22  ;;  %s1293_s12 = sld [smem:[#allocation6 + $0x6]]  ;;  %v399_v29 = vsel %vm396_vm8, %v398_v27, %v389_v23  ;;  %s1306_s15 = sld [smem:[#allocation6 + $0x7]]  ;;  %v411_v35 = vstv %s1252_s26  ;;  %vm348_vm1 = vcmp.eq.s32.totalorder %v1211_v0, 8 }
  0x56   : > { %s1295_s13 = sld [smem:[#allocation7 + $0x6]]  ;;  %v402_v30 = vsel %vm396_vm8, %v401_v28, %v392_v24  ;;  %v404_v31 = vstv %s1247_s23  ;;  %v409_v34 = vsel %vm406_vm9, %v408_v32, %v399_v29  ;;  %v414_v36 = vstv %s1259_s27  ;;  %s1314_s16 = sld [smem:[#allocation7 + $0x7]] }
  0x57   : > { %v405_v33 = vsel %vm396_vm8, %v404_v31, %v395_v26  ;;  %s1316_s17 = sld [smem:[#allocation4 + $0x8]]  ;;  %v412_v37 = vsel %vm406_vm9, %v411_v35, %v402_v30  ;;  %v418_v39 = vstv %s1261_s29  ;;  %v428_v44 = vstv %s1274_s8  ;;  %s1334_s20 = sld [smem:[#allocation4 + $0x9]] }
  0x58   : > { %v415_v38 = vsel %vm406_vm9, %v414_v36, %v405_v33  ;;  %v421_v40 = vstv %s1267_s30  ;;  %s1324_s18 = sld [smem:[#allocation6 + $0x8]]  ;;  %v419_v41 = vsel %vm416_vm10, %v418_v39, %v409_v34  ;;  %s1336_s22 = sld [smem:[#allocation6 + $0x9]]  ;;  %v431_v47 = vstv %s1276_s9 }
  0x59   : > { %s1326_s19 = sld [smem:[#allocation7 + $0x8]]  ;;  %v422_v42 = vsel %vm416_vm10, %v421_v40, %v412_v37  ;;  %v424_v43 = vstv %s1269_s7  ;;  %v429_v46 = vsel %vm426_vm11, %v428_v44, %v419_v41  ;;  %v434_v48 = vstv %s1284_s10  ;;  %s1344_s23 = sld [smem:[#allocation7 + $0x9]] }
  0x5a   : > { %v425_v45 = vsel %vm416_vm10, %v424_v43, %v415_v38  ;;  %s1346_s24 = sld [smem:[#allocation4 + $0xa]]  ;;  %v432_v49 = vsel %vm426_vm11, %v431_v47, %v422_v42  ;;  %v438_v51 = vstv %s1286_s11  ;;  %v448_v56 = vstv %s1304_s14  ;;  %s1364_s29 = sld [smem:[#allocation4 + $0xb]] }
  0x5b   : > { %v435_v50 = vsel %vm426_vm11, %v434_v48, %v425_v45  ;;  %v441_v52 = vstv %s1293_s12  ;;  %s1354_s26 = sld [smem:[#allocation6 + $0xa]]  ;;  %v439_v53 = vsel %vm436_vm12, %v438_v51, %v429_v46  ;;  %s1366_s30 = sld [smem:[#allocation6 + $0xb]]  ;;  %v451_v59 = vstv %s1306_s15 }
  0x5c   : > { %s1356_s27 = sld [smem:[#allocation7 + $0xa]]  ;;  %v442_v54 = vsel %vm436_vm12, %v441_v52, %v432_v49  ;;  %v444_v55 = vstv %s1295_s13  ;;  %v449_v58 = vsel %vm446_vm13, %v448_v56, %v439_v53  ;;  %v454_v60 = vstv %s1314_s16  ;;  %s1374_s7 = sld [smem:[#allocation7 + $0xb]] }
  0x5d   : > { %v445_v57 = vsel %vm436_vm12, %v444_v55, %v435_v50  ;;  %s1376_s8 = sld [smem:[#allocation4 + $0xc]]  ;;  %v452_v61 = vsel %vm446_vm13, %v451_v59, %v442_v54  ;;  %v458_v63 = vstv %s1316_s17  ;;  %s1394_s11 = sld [smem:[#allocation4 + $0xd]]  ;;  %v468_v6 = vstv %s1334_s20 }
  0x5e   : > { %v455_v62 = vsel %vm446_vm13, %v454_v60, %v445_v57  ;;  %v461_v1 = vstv %s1324_s18  ;;  %s1384_s9 = sld [smem:[#allocation6 + $0xc]]  ;;  %v459_v2 = vsel %vm456_vm14, %v458_v63, %v449_v58  ;;  %s1396_s12 = sld [smem:[#allocation6 + $0xd]]  ;;  %v471_v7 = vstv %s1336_s22 }
  0x5f   : > { %s1386_s10 = sld [smem:[#allocation7 + $0xc]]  ;;  %v462_v3 = vsel %vm456_vm14, %v461_v1, %v452_v61  ;;  %v464_v4 = vstv %s1326_s19  ;;  %v474_v8 = vstv %s1344_s23  ;;  %s1403_s13 = sld [smem:[#allocation7 + $0xd]]  ;;  %v469_v9 = vsel %vm466_vm15, %v468_v6, %v459_v2 }
  0x60   : > { %v465_v5 = vsel %vm456_vm14, %v464_v4, %v455_v62  ;;  %s1405_s14 = sld [smem:[#allocation4 + $0xe]]  ;;  %v472_v10 = vsel %vm466_vm15, %v471_v7, %v462_v3  ;;  %s1413_s17 = sld [smem:[#allocation2 + $0x9]]  ;;  %v478_v12 = vstv %s1346_s24  ;;  %vm486_vm2 = vcmp.eq.s32.totalorder %v1237_v13, 11 }
  0x61   : > { %v475_v11 = vsel %vm466_vm15, %v474_v8, %v465_v5  ;;  %s1408_s15 = sld [smem:[#allocation6 + $0xe]]  ;;  %v481_v14 = vstv %s1354_s26  ;;  %s1419_s18 = sld [smem:[#allocation4 + $0xf]]  ;;  %v479_v18 = vsel %vm476_vm0, %v478_v12, %v469_v9  ;;  %v488_v21 = vstv %s1364_s29 }
  0x62   : > { %s1410_s16 = sld [smem:[#allocation7 + $0xe]]  ;;  %v484_v15 = vstv %s1356_s27  ;;  %v482_v19 = vsel %vm476_vm0, %v481_v14, %v472_v10  ;;  %s1422_s19 = sld [smem:[#allocation6 + $0xf]]  ;;  %v489_v22 = vsel %vm486_vm2, %v488_v21, %v479_v18  ;;  %v491_v23 = vstv %s1366_s30 }
  0x63   : > { %v485_v20 = vsel %vm476_vm0, %v484_v15, %v475_v11  ;;  %s1424_s20 = sld [smem:[#allocation7 + $0xf]]  ;;  %v494_v24 = vstv %s1374_s7  ;;  %vm496_vm3 = vcmp.eq.s32.totalorder %v1237_v13, 12  ;;  %s1431_s22 = sld [smem:[#allocation4 + $0x10]]  ;;  %vm352_vm4 = vcmp.eq.s32.totalorder %v1211_v0, 9 }
  0x64   : > { %s1433_s23 = sld [smem:[#allocation6 + $0x10]]  ;;  %v492_v25 = vsel %vm486_vm2, %v491_v23, %v482_v19  ;;  %v495_v26 = vsel %vm486_vm2, %v494_v24, %v485_v20  ;;  %v498_v27 = vstv %s1376_s8  ;;  %v501_v28 = vstv %s1384_s9  ;;  %s1450_s26 = sld [smem:[#allocation4 + $0x11]] }
  0x65   : > { %s1442_s24 = sld [smem:[#allocation7 + $0x10]]  ;;  %v499_v29 = vsel %vm496_vm3, %v498_v27, %v489_v22  ;;  %v502_v30 = vsel %vm496_vm3, %v501_v28, %v492_v25  ;;  %v504_v31 = vstv %s1386_s10  ;;  %vm506_vm5 = vcmp.eq.s32.totalorder %v1237_v13, 13  ;;  %s1452_s27 = sld [smem:[#allocation6 + $0x11]] }
  0x66   : > { %s1454_s29 = sld [smem:[#allocation2 + $0xa]]  ;;  %v505_v32 = vsel %vm496_vm3, %v504_v31, %v495_v26  ;;  %v508_v33 = vstv %s1394_s11  ;;  %v511_v34 = vstv %s1396_s12  ;;  %v514_v35 = vstv %s1403_s13  ;;  %s1467_s8 = sld [smem:[#allocation2 + $0xb]] }
  0x67   : > { %v509_v36 = vsel %vm506_vm5, %v508_v33, %v499_v29  ;;  %v512_v37 = vsel %vm506_vm5, %v511_v34, %v502_v30  ;;  %v515_v38 = vsel %vm506_vm5, %v514_v35, %v505_v32  ;;  %vm516_vm6 = vcmp.eq.s32.totalorder %v1237_v13, 14  ;;  %s1462_s30 = sld [smem:[#allocation4 + $0x12]]  ;;  %s1473_s9 = sld [smem:[#allocation4 + $0x13]] }
  0x68   : > { %s1464_s7 = sld [smem:[#allocation6 + $0x12]]  ;;  %vm356_vm7 = vcmp.eq.s32.totalorder %v1211_v0, 10  ;;  %v518_v39 = vstv %s1405_s14  ;;  %v521_v40 = vstv %s1408_s15  ;;  %v524_v41 = vstv %s1410_s16  ;;  %s1476_s10 = sld [smem:[#allocation7 + $0x11]] }
  0x69   : > { %vm526_vm8 = vcmp.eq.s32.totalorder %v1237_v13, 15  ;;  %v519_v42 = vsel %vm516_vm6, %v518_v39, %v509_v36  ;;  %v522_v43 = vsel %vm516_vm6, %v521_v40, %v512_v37  ;;  %v525_v44 = vsel %vm516_vm6, %v524_v41, %v515_v38  ;;  %s1478_s11 = sld [smem:[#allocation6 + $0x13]]  ;;  %s1485_s12 = sld [smem:[#allocation4 + $0x14]] }
  0x6a   : > { %v528_v45 = vstv %s1419_s18  ;;  %v531_v47 = vstv %s1422_s19  ;;  %v534_v48 = vstv %s1424_s20  ;;  %vm536_vm9 = vcmp.eq.s32.totalorder %v1237_v13, 16  ;;  %s1487_s13 = sld [smem:[#allocation6 + $0x14]]  ;;  %s1495_s14 = sld [smem:[#allocation7 + $0x12]] }
  0x6b   : > { %v529_v46 = vsel %vm526_vm8, %v528_v45, %v519_v42  ;;  %v354_v49 = vstv %s1413_s17  ;;  %vm360_vm10 = vcmp.eq.s32.totalorder %v1211_v0, 11  ;;  %v532_v50 = vsel %vm526_vm8, %v531_v47, %v522_v43  ;;  %s1507_s15 = sld [smem:[#allocation4 + $0x15]]  ;;  %s1511_s17 = sld [smem:[#allocation2 + $0xc]] }
  0x6c   : > { %v538_v51 = vstv %s1431_s22  ;;  %v541_v52 = vstv %s1433_s23  ;;  %v351_v53 = vsel %vm348_vm1, %v350_v16, %v1254_v17  ;;  %vm546_vm11 = vcmp.eq.s32.totalorder %v1237_v13, 17  ;;  %s1509_s16 = sld [smem:[#allocation6 + $0x15]]  ;;  %s1524_s25 = sld [smem:[#allocation4 + $0x16]] }
  0x6d   : > { %v539_v54 = vsel %vm536_vm9, %v538_v51, %v529_v46  ;;  %v542_v55 = vsel %vm536_vm9, %v541_v52, %v532_v50  ;;  %v535_v56 = vsel %vm526_vm8, %v534_v48, %v525_v44  ;;  %v544_v16 = vstv %s1442_s24  ;;  %s1526_s18 = sld [smem:[#allocation6 + $0x16]]  ;;  %s1531_s19 = sld [smem:[#allocation2 + $0xd]] }
  0x6e   : > { %v548_v17 = vstv %s1450_s26  ;;  %v551_v57 = vstv %s1452_s27  ;;  %v358_v58 = vstv %s1454_s29  ;;  %vm556_vm12 = vcmp.eq.s32.totalorder %v1237_v13, 18  ;;  %s1536_s20 = sld [smem:[#allocation4 + $0x17]]  ;;  %s1545_s22 = sld [smem:[#allocation7 + $0x13]] }
  0x6f   : > { %v549_v59 = vsel %vm546_vm11, %v548_v17, %v539_v54  ;;  %v552_v60 = vsel %vm546_vm11, %v551_v57, %v542_v55  ;;  %v355_v61 = vsel %vm352_vm4, %v354_v49, %v351_v53  ;;  %vm364_vm13 = vcmp.eq.s32.totalorder %v1211_v0, 12  ;;  %s1547_s23 = sld [smem:[#allocation6 + $0x17]]  ;;  %s1554_s24 = sld [smem:[#allocation4 + $0x18]] }
  0x70   : > { %v558_v62 = vstv %s1462_s30  ;;  %v561_v63 = vstv %s1464_s7  ;;  %vm566_vm14 = vcmp.eq.s32.totalorder %v1237_v13, 19  ;;  %v545_v1 = vsel %vm536_vm9, %v544_v16, %v535_v56  ;;  %s1556_s26 = sld [smem:[#allocation6 + $0x18]]  ;;  %s1564_s27 = sld [smem:[#allocation7 + $0x14]] }
  0x71   : > { %v559_v2 = vsel %vm556_vm12, %v558_v62, %v549_v59  ;;  %v562_v3 = vsel %vm556_vm12, %v561_v63, %v552_v60  ;;  %v568_v4 = vstv %s1473_s9  ;;  %v554_v5 = vstv %s1476_s10  ;;  %s1573_s29 = sld [smem:[#allocation4 + $0x19]]  ;;  %s1577_s7 = sld [smem:[#allocation2 + $0xe]] }
  0x72   : > { %v569_v6 = vsel %vm566_vm14, %v568_v4, %v559_v2  ;;  %v571_v7 = vstv %s1478_s11  ;;  %vm576_vm15 = vcmp.eq.s32.totalorder %v1237_v13, 20  ;;  %v362_v8 = vstv %s1467_s8  ;;  %s1575_s30 = sld [smem:[#allocation6 + $0x19]]  ;;  %s1590_s8 = sld [smem:[#allocation4 + $0x1a]] }
  0x73   : > { %vm368_vm0 = vcmp.eq.s32.totalorder %v1211_v0, 13  ;;  %v572_v9 = vsel %vm566_vm14, %v571_v7, %v562_v3  ;;  %v578_v10 = vstv %s1485_s12  ;;  %v581_v11 = vstv %s1487_s13  ;;  %s1592_s9 = sld [smem:[#allocation6 + $0x1a]]  ;;  %s1599_s10 = sld [smem:[#allocation4 + $0x1b]] }
  0x74   : > { %v359_v12 = vsel %vm356_vm7, %v358_v58, %v355_v61  ;;  %v579_v14 = vsel %vm576_vm15, %v578_v10, %v569_v6  ;;  %v582_v15 = vsel %vm576_vm15, %v581_v11, %v572_v9  ;;  %vm586_vm1 = vcmp.eq.s32.totalorder %v1237_v13, 21  ;;  %s1604_s11 = sld [smem:[#allocation7 + $0x15]]  ;;  %s1611_s12 = sld [smem:[#allocation6 + $0x1b]] }
  0x75   : > { %v555_v18 = vsel %vm546_vm11, %v554_v5, %v545_v1  ;;  %v564_v19 = vstv %s1495_s14  ;;  %v588_v20 = vstv %s1507_s15  ;;  %v591_v21 = vstv %s1509_s16  ;;  %s1618_s13 = sld [smem:[#allocation4 + $0x1c]]  ;;  %s1623_s15 = sld [smem:[#allocation2 + $0xf]] }
  0x76   : > { %v366_v22 = vstv %s1511_s17  ;;  %v589_v23 = vsel %vm586_vm1, %v588_v20, %v579_v14  ;;  %v592_v24 = vsel %vm586_vm1, %v591_v21, %v582_v15  ;;  %vm596_vm2 = vcmp.eq.s32.totalorder %v1237_v13, 22  ;;  %s1620_s14 = sld [smem:[#allocation6 + $0x1c]]  ;;  %s1636_s16 = sld [smem:[#allocation4 + $0x1d]] }
  0x77   : > { %v363_v25 = vsel %vm360_vm10, %v362_v8, %v359_v12  ;;  %v598_v26 = vstv %s1524_s25  ;;  %v601_v27 = vstv %s1526_s18  ;;  %vm606_vm3 = vcmp.eq.s32.totalorder %v1237_v13, 23  ;;  %s1638_s17 = sld [smem:[#allocation6 + $0x1d]]  ;;  %s1643_s25 = sld [smem:[#allocation7 + $0x16]] }
  0x78   : > { %vm372_vm4 = vcmp.eq.s32.totalorder %v1211_v0, 14  ;;  %v565_v28 = vsel %vm556_vm12, %v564_v19, %v555_v18  ;;  %v599_v29 = vsel %vm596_vm2, %v598_v26, %v589_v23  ;;  %v602_v30 = vsel %vm596_vm2, %v601_v27, %v592_v24  ;;  %s1653_s18 = sld [smem:[#allocation4 + $0x1e]] }
  0x79   : > { %v608_v31 = vstv %s1536_s20  ;;  %v574_v32 = vstv %s1545_s22  ;;  %v611_v34 = vstv %s1547_s23  ;;  %vm616_vm5 = vcmp.eq.s32.totalorder %v1237_v13, 24  ;;  %s1662_s20 = sld [smem:[#allocation4 + $0x1f]] }
  0x7a   : > { %v609_v33 = vsel %vm606_vm3, %v608_v31, %v599_v29  ;;  %v370_v35 = vstv %s1531_s19  ;;  %v612_v36 = vsel %vm606_vm3, %v611_v34, %v602_v30  ;;  %v618_v37 = vstv %s1554_s24  ;;  %s1655_s19 = sld [smem:[#allocation6 + $0x1e]]  ;;  %s1666_s22 = sld [smem:[#allocation7 + $0x17]] }
  0x7b   : > { %v621_v38 = vstv %s1556_s26  ;;  %v367_v39 = vsel %vm364_vm13, %v366_v22, %v363_v25  ;;  %v619_v40 = vsel %vm616_vm5, %v618_v37, %v609_v33  ;;  %vm626_vm6 = vcmp.eq.s32.totalorder %v1237_v13, 25  ;;  %s1673_s23 = sld [smem:[#allocation6 + $0x1f]]  ;;  %s1686_s24 = sld [smem:[#allocation7 + $0x18]] }
  0x7c   : > { %v622_v41 = vsel %vm616_vm5, %v621_v38, %v612_v36  ;;  %v575_v42 = vsel %vm566_vm14, %v574_v32, %v565_v28  ;;  %v584_v43 = vstv %s1564_s27  ;;  %v628_v44 = vstv %s1573_s29  ;;  %s918_s26 = sld [smem:[#allocation7 + $0x19]]  ;;  %s921_s27 = sld [smem:[#allocation7 + $0x1a]] }
  0x7d   : > { %v631_v45 = vstv %s1575_s30  ;;  %v374_v46 = vstv %s1577_s7  ;;  %v629_v47 = vsel %vm626_vm6, %v628_v44, %v619_v40  ;;  %vm636_vm7 = vcmp.eq.s32.totalorder %v1237_v13, 26  ;;  %s924_s29 = sld [smem:[#allocation7 + $0x1b]]  ;;  %s927_s30 = sld [smem:[#allocation7 + $0x1c]] }
  0x7e   : > { %v632_v48 = vsel %vm626_vm6, %v631_v45, %v622_v41  ;;  %v371_v49 = vsel %vm368_vm0, %v370_v35, %v367_v39  ;;  %v638_v50 = vstv %s1590_s8  ;;  %v641_v51 = vstv %s1592_s9  ;;  %s930_s7 = sld [smem:[#allocation7 + $0x1d]]  ;;  %s933_s8 = sld [smem:[#allocation7 + $0x1e]] }
  0x7f   : > { %vm646_vm8 = vcmp.eq.s32.totalorder %v1237_v13, 27  ;;  %v585_v52 = vsel %vm576_vm15, %v584_v43, %v575_v42  ;;  %v639_v53 = vsel %vm636_vm7, %v638_v50, %v629_v47  ;;  %v642_v54 = vsel %vm636_vm7, %v641_v51, %v632_v48  ;;  %s936_s9 = sld [smem:[#allocation7 + $0x1f]] }
  0x80   : > { %v648_v55 = vstv %s1599_s10  ;;  %v594_v56 = vstv %s1604_s11  ;;  %v651_v17 = vstv %s1611_s12  ;;  %vm656_vm9 = vcmp.eq.s32.totalorder %v1237_v13, 28  ;;  %s315_s12 = scalar_lea.vmem %s1755_s6, %s1205_s28 }
  0x81   : > { %v649_v16 = vsel %vm646_vm8, %v648_v55, %v639_v53  ;;  %vm376_vm10 = vcmp.eq.s32.totalorder %v1211_v0, 15  ;;  %v652_v57 = vsel %vm646_vm8, %v651_v17, %v642_v54  ;;  %v658_v58 = vstv %s1618_s13 }
  0x82   : > { %v661_v59 = vstv %s1620_s14  ;;  %v378_v60 = vstv %s1623_s15  ;;  %v659_v61 = vsel %vm656_vm9, %v658_v58, %v649_v16  ;;  %vm666_vm11 = vcmp.eq.s32.totalorder %v1237_v13, 29 }
  0x83   : > { %v662_v62 = vsel %vm656_vm9, %v661_v59, %v652_v57  ;;  %v375_v63 = vsel %vm372_vm4, %v374_v46, %v371_v49  ;;  %v595_v1 = vsel %vm586_vm1, %v594_v56, %v585_v52  ;;  %v668_v2 = vstv %s1636_s16 }
  0x84   : > { %v671_v3 = vstv %s1638_s17  ;;  %v604_v4 = vstv %s1643_s25  ;;  %v669_v5 = vsel %vm666_vm11, %v668_v2, %v659_v61  ;;  %vm676_vm12 = vcmp.eq.s32.totalorder %v1237_v13, 30 }
  0x85   : > { %v672_v6 = vsel %vm666_vm11, %v671_v3, %v662_v62  ;;  %v678_v7 = vstv %s1653_s18  ;;  %v681_v8 = vstv %s1655_s19  ;;  %vm686_vm13 = vcmp.eq.s32.totalorder %v1237_v13, 31 }
  0x86   : > { %v379_v9 = vsel %vm376_vm10, %v378_v60, %v375_v63  ;;  %v679_v10 = vsel %vm676_vm12, %v678_v7, %v669_v5  ;;  %v682_v11 = vsel %vm676_vm12, %v681_v8, %v672_v6  ;;  %v688_v12 = vstv %s1662_s20 }
  0x87   : > { %v605_v14 = vsel %vm596_vm2, %v604_v4, %v595_v1  ;;  %v614_v15 = vstv %s1666_s22  ;;  %v691_v18 = vstv %s1673_s23  ;;  %v689_v19 = vsel %vm686_vm13, %v688_v12, %v679_v10 }
  0x88   : > { %v692_v0 = vsel %vm686_vm13, %v691_v18, %v682_v11  ;;  %v615_v21 = vsel %vm606_vm3, %v614_v15, %v605_v14  ;;  %v624_v22 = vstv %s1686_s24  ;;  %v634_v25 = vstv %s918_s26 }
  0x89   : > { %v697_v20 = vsub.f32 %v379_v9, %v692_v0  ;;  %v625_v24 = vsel %vm616_vm5, %v624_v22, %v615_v21  ;;  %v644_v29 = vstv %s921_s27  ;;  %v654_v31 = vstv %s924_s29 }
  0x8a   : > { %v635_v28 = vsel %vm626_vm6, %v634_v25, %v625_v24  ;;  %v664_v33 = vstv %s927_s30  ;;  %v674_v35 = vstv %s930_s7  ;;  %v684_v38 = vstv %s933_s8 }
  0x8b   : > { %v698_v23 = vmul.f32 %v697_v20, %v689_v19  ;;  %v645_v30 = vsel %vm636_vm7, %v644_v29, %v635_v28  ;;  %v694_v41 = vstv %s936_s9 }
  0x8c   : > { %v655_v32 = vsel %vm646_vm8, %v654_v31, %v645_v30 }
  0x8d   : > { %v699_v26 = vsub.f32 0.0, %v698_v23  ;;  %v665_v34 = vsel %vm656_vm9, %v664_v33, %v655_v32 }
  0x8e   : > { %v675_v37 = vsel %vm666_vm11, %v674_v35, %v665_v34 }
  0x8f   : > { %v700_v27 = vmul.f32 1.442695, %v699_v26  ;;  %v685_v40 = vsel %vm676_vm12, %v684_v38, %v675_v37 }
  0x90   : > { %v695_v42 = vsel %vm686_vm13, %v694_v41, %v685_v40 }
  0x91   : > { %988 = vpow2.f32 %v700_v27  ;;  %v696_v43 = vsub.f32 1.0, %v695_v42 }
  0x9b   : > { %v989_v36 = vpop.eup %988 }
  0x9c   : > { %v702_v39 = vadd.f32 1.0, %v989_v36 }
  0x9e   : > { %990 = vrcp.f32 %v702_v39 }
  0xa8   : > { %v991_v44 = vpop.eup %990 }
  0xa9   : > { %v704_v45 = vmul.f32 %v991_v44, %v696_v43 }
  0xab   : > { %v705_v46 = vadd.f32 %v704_v45, %v695_v42 }
  0xad   : > { %706 = vst [vmem:[%s315_s12] sm:$0xff] %v705_v46 }
  0xae PF: > { %s19_s21 = sadd.s32 1, %s1070_s21  }
  0xaf   : > { %p16_p2 = scmp.ge.s32.totalorder %s19_s21, 4  }
  0xb1   :  { %18 = sbr.rel (!%p16_p2) target bundleno = 3 (0x3), region = 94 }
  0xb8   :  { %726 = vsyncpa [#allocation3], 1 }
  0xb9   :  { %728 = vsyncpa [#allocation3 + $0x1], 1 }
  0xba   :  { %729 = vsyncpa [#allocation5], 1 }
  0xbb   :  { %730 = vsyncpa [#allocation8], 1 }

</bundles_post_ra>
